<compile_context>
chip_gen: v7x
topology: tpu7x:2x2x1
jax: 0.10.0
libtpu: 0.0.40
codegen_flags: <defaults>
</compile_context>

<pallas_src>
import jax
import jax.numpy as jnp
from jax.experimental import pallas as pl
from jax.experimental.pallas import tpu as pltpu


def _linear_kernel(x_ref, w_ref, b_ref, o_ref):
    # One MXU matmul with an f32 accumulator + broadcast bias add.
    acc = jnp.dot(x_ref[...], w_ref[...], preferred_element_type=jnp.float32)
    o_ref[...] = (acc + b_ref[...]).astype(o_ref.dtype)


def prepare_params(weight, bias, *, lane=128):
    """One-time parameter prep (hoisted off the per-call path).

    weight: (V, D) PyTorch nn.Linear layout
    bias:   (V,)

    Returns:
      w_t:   (D, Vp)  pre-transposed, V padded up to a multiple of `lane`
      b2:    (1, Vp)  padded bias, kept 2-D for TPU tiling
      v_out: V        true (unpadded) output width
    """
    V, D = weight.shape
    Vp = pl.cdiv(V, lane) * lane
    w_t = weight.T                                    # (D, V)
    b = bias
    if Vp != V:
        w_t = jnp.pad(w_t, ((0, 0), (0, Vp - V)))
        b = jnp.pad(b, ((0, Vp - V),))
    return w_t, b.reshape(1, Vp), V


def primitive_type_forward(x, w_t, b2, v_out, *, batch_tile=256):
    """y = x @ weight.T + bias  (PyTorch nn.Linear semantics).

    x:     (B, D)  float32
    w_t:   (D, Vp) pre-transposed + lane-padded weight (from prepare_params)
    b2:    (1, Vp) padded bias
    v_out: true output width V (<= Vp)
    returns (B, V) float32
    """
    B, D = x.shape
    D2, Vp = w_t.shape
    assert D == D2, "in_features mismatch"

    itemsize = jnp.dtype(x.dtype).itemsize
    cost = pl.CostEstimate(
        flops=2 * B * D * Vp,
        transcendentals=0,
        bytes_accessed=(x.size + w_t.size + b2.size + B * Vp) * itemsize,
    )

    if B <= batch_tile:
        # ---- Grid-free path: whole problem lives in one VMEM slab. ----
        out = pl.pallas_call(
            _linear_kernel,
            out_shape=jax.ShapeDtypeStruct((B, Vp), x.dtype),
            in_specs=[
                pl.BlockSpec(memory_space=pltpu.MemorySpace.VMEM),
                pl.BlockSpec(memory_space=pltpu.MemorySpace.VMEM),
                pl.BlockSpec(memory_space=pltpu.MemorySpace.VMEM),
            ],
            out_specs=pl.BlockSpec(memory_space=pltpu.MemorySpace.VMEM),
            cost_estimate=cost,
        )(x, w_t, b2)
    else:
        # ---- Batch-tiled path: pipeline over B, weight/bias VMEM-resident. ----
        tm = batch_tile
        B_pad = pl.cdiv(B, tm) * tm
        x_in = x if B_pad == B else jnp.pad(x, ((0, B_pad - B), (0, 0)))

        out = pl.pallas_call(
            _linear_kernel,
            out_shape=jax.ShapeDtypeStruct((B_pad, Vp), x.dtype),
            grid=(B_pad // tm,),
            in_specs=[
                pl.BlockSpec((tm, D), lambda i: (i, 0)),
                pl.BlockSpec((D, Vp), lambda i: (0, 0)),   # resident across grid
                pl.BlockSpec((1, Vp), lambda i: (0, 0)),   # resident across grid
            ],
            out_specs=pl.BlockSpec((tm, Vp), lambda i: (i, 0)),
            compiler_params=pltpu.CompilerParams(
                dimension_semantics=("parallel",),
                vmem_limit_bytes=32 * 1024 * 1024,  # safe on v7x's smaller VMEM
            ),
            cost_estimate=cost,
        )(x_in, w_t, b2)
        if B_pad != B:
            out = out[:B]

    # Strip lane padding back to the true vocab width.
    return out[:, :v_out] if Vp != v_out else out


if __name__ == "__main__":
    # Shapes consistent with the module's __init__:
    #   in_features = 2 * enc_hid_size + field_emb_size = 2*32 + 16 = 80
    #   out_features = len(vocab) = 64
    batch = 8
    enc_hid_size = 32
    field_emb_size = 16
    vocab_size = 64
    in_features = 2 * enc_hid_size + field_emb_size

    key = jax.random.PRNGKey(0)
    kx, kw, kb, kx_big = jax.random.split(key, 4)

    # nn.Linear-style uniform(-1/sqrt(D), 1/sqrt(D)) init.
    bound = 1.0 / jnp.sqrt(jnp.float32(in_features))
    x = jax.random.normal(kx, (batch, in_features), dtype=jnp.float32)
    weight = jax.random.uniform(
        kw, (vocab_size, in_features), dtype=jnp.float32, minval=-bound, maxval=bound
    )
    bias = jax.random.uniform(
        kb, (vocab_size,), dtype=jnp.float32, minval=-bound, maxval=bound
    )

    # One-time parameter prep (transpose + lane padding), hoisted off the
    # per-call path.
    w_t, b2, v_out = prepare_params(weight, bias)
    w_t, b2 = jax.block_until_ready((w_t, b2))

    # --- Small batch: grid-free path. ---
    y = primitive_type_forward(x, w_t, b2, v_out)
    y = jax.block_until_ready(y)
    y_ref = x @ weight.T + bias
    assert y.shape == (batch, vocab_size)
    assert jnp.allclose(y, y_ref, atol=1e-5, rtol=1e-5), "mismatch vs reference (small)"

    # --- Larger batch: batch-tiled path (weight VMEM-resident, parallel axis). ---
    big_batch = 512
    xb = jax.random.normal(kx_big, (big_batch, in_features), dtype=jnp.float32)
    yb = primitive_type_forward(xb, w_t, b2, v_out, batch_tile=128)
    yb = jax.block_until_ready(yb)
    yb_ref = xb @ weight.T + bias
    assert yb.shape == (big_batch, vocab_size)
    assert jnp.allclose(yb, yb_ref, atol=1e-4, rtol=1e-4), "mismatch vs reference (tiled)"

    # TODO(synk): score() (log_softmax over logits) is not part of forward();
    # left to XLA / a separate fused kernel if needed.
    print("KERNEL_OK")
</pallas_src>

<mosaic_0001>
module attributes {stable_mosaic.version = 11 : i64} {
  func.func @_linear_kernel(%arg0: memref<8x80xf32, #tpu.memory_space<vmem>>, %arg1: memref<80x128xf32, #tpu.memory_space<vmem>>, %arg2: memref<1x128xf32, #tpu.memory_space<vmem>>, %arg3: memref<8x128xf32, #tpu.memory_space<vmem>>) attributes {dimension_semantics = [], scalar_prefetch = 0 : i64, scratch_operands = 0 : i64, tpu.core_type = #tpu.core_type<tc>} {
    %c0 = arith.constant 0 : index
    %c0_0 = arith.constant 0 : index
    %0 = vector.load %arg0[%c0, %c0_0] : memref<8x80xf32, #tpu.memory_space<vmem>>, vector<8x80xf32>
    %c0_1 = arith.constant 0 : index
    %c0_2 = arith.constant 0 : index
    %1 = vector.load %arg1[%c0_1, %c0_2] : memref<80x128xf32, #tpu.memory_space<vmem>>, vector<80x128xf32>
    %cst = arith.constant dense<0.000000e+00> : vector<8x128xf32>
    %2 = tpu.matmul %0, %1, %cst {dimension_numbers = #tpu.dot_dimension_numbers<[1], [0], [0], [1], [0, 0, 1, 1], [], []>} : vector<8x80xf32>, vector<80x128xf32>, vector<8x128xf32> -> vector<8x128xf32>
    %c0_3 = arith.constant 0 : index
    %c0_4 = arith.constant 0 : index
    %3 = vector.load %arg2[%c0_3, %c0_4] : memref<1x128xf32, #tpu.memory_space<vmem>>, vector<1x128xf32>
    %4 = vector.broadcast %3 : vector<1x128xf32> to vector<8x128xf32>
    %5 = arith.addf %2, %4 : vector<8x128xf32>
    %c0_5 = arith.constant 0 : index
    %c0_6 = arith.constant 0 : index
    %6 = vector.load %arg3[%c0_5, %c0_6] : memref<8x128xf32, #tpu.memory_space<vmem>>, vector<8x128xf32>
    tpu.vector_store %arg3[%c0_5, %c0_6], %5 {strides = array<i32>} : memref<8x128xf32, #tpu.memory_space<vmem>>, vector<8x128xf32>,
    return
  }
}

</mosaic_0001>

<bundles_post_ra>
// kernel: tpu_custom_call.1
= control target key start
LH: loop header
LB: loop body
LE: loop exit
PB: predicated region body
PF: predicated region fallthrough
CT: control target
= control target key end

     0   :  { %8 = vsyncpa [#allocation3], 0  ;;  %s355_s0 = inlined_call_operand.hbm [shape: f32[8,80], index: 0, kind: input, shape index: {}]   ;;  %s356_s1 = inlined_call_operand.hbm [shape: f32[80,128], index: 1, kind: input, shape index: {}]   ;;  %s357_s2 = inlined_call_operand.vmem [shape: f32[1,128], index: 2, kind: input, shape index: {}]   ;;  %s358_s3 = inlined_call_operand.hbm [shape: f32[8,128], index: 3, kind: output, shape index: {}]  }
   0x1   :  { %9 = vsyncpa [#allocation6], 0 }
   0x2   :  { %10 = vsyncpa [#allocation4], 0  ;;  %s281_s12 = smov [#allocation2]   ;;  %s282_s14 = smov [#allocation5]  }
   0x3   :  { %s17_s13 = sshll.u32 %s281_s12, 4  ;;  %s26_s15 = sshll.u32 %s282_s14, 4  ;;  %s18_s13 = int_to_ptr.vmem [resolvable:$true] %s17_s13  ;;  %s309_s15 = int_to_ptr.vmem [resolvable:$true] %s26_s15 }
   0x4   :  { %s209_s18 = scalar_lea.hbm %s355_s0, 128 }
   0x5   :  { %p210_p0 = scmp.ne.s32.totalorder %s355_s0, %s209_s18  ;;  %p213_p1 = scmp.lt.u32.totalorder %s209_s18, %s355_s0 }
   0x7   :  { %p215_p2 = pnand %p213_p1, %p210_p0 }
   0x9   :  { %218 = shalt.err (!%p215_p2)
}
   0xa   :  { %s219_s23 = scalar_lea.vmem %s18_s13, 128  ;;  %p224_p4 = scmp.lt.s32.totalorder %s18_s13, %s18_s13 }
   0xb   :  { %p220_p3 = scmp.ne.s32.totalorder %s18_s13, %s219_s23  ;;  %p225_p5 = scmp.lt.s32.totalorder %s219_s23, %s219_s23 }
   0xd   :  { %p226_p6 = por %p225_p5, %p224_p4 }
   0xf   :  { %p227_p7 = pnand %p226_p6, %p220_p3 }
  0x11   :  { %230 = shalt.err (!%p227_p7)
}
  0x12   :  { %20 = dma.hbm_to_vmem [thread:$0]  %s355_s0, 128, %s18_s13, [#allocation3]  }
  0x13   :  { %s231_s28 = scalar_lea.hbm %s356_s1, 1280 }
  0x14   :  { %p232_p8 = scmp.ne.s32.totalorder %s356_s1, %s231_s28  ;;  %p235_p9 = scmp.lt.u32.totalorder %s231_s28, %s356_s1 }
  0x16   :  { %p237_p10 = pnand %p235_p9, %p232_p8 }
  0x18   :  { %240 = shalt.err (!%p237_p10)
}
  0x19   :  { %s241_s6 = scalar_lea.vmem %s309_s15, 1280  ;;  %p246_p12 = scmp.lt.s32.totalorder %s309_s15, %s309_s15 }
  0x1a   :  { %p242_p11 = scmp.ne.s32.totalorder %s309_s15, %s241_s6  ;;  %p247_p13 = scmp.lt.s32.totalorder %s241_s6, %s241_s6 }
  0x1c   :  { %p248_p0 = por %p247_p13, %p246_p12 }
  0x1e   :  { %p249_p1 = pnand %p248_p0, %p242_p11 }
  0x20   :  { %252 = shalt.err (!%p249_p1)
}
  0x21   :  { %s283_s0 = smov 128   ;;  %s284_s7 = smov 8  }
  0x22   :  { %32 = dma.hbm_to_vmem [thread:$0]  %s356_s1, 1280, %s309_s15, [#allocation6], %s283_s0, %s283_s0, %s284_s7  }
  0x23   :  { %275 = dma.done.wait [#allocation3], 128  }
  0x24   :  { %276 = vsyncadd [#allocation3], 4294967168 }
  0x25   :  { %277 = dma.done.wait [#allocation6], 1280  }
  0x26   :  { %278 = vsyncadd [#allocation6], 4294966016  ;;  %v285_v0 = vmov 0.0|0.0   ;;  %vm286_vm0 = vmmov 0   ;;  %v287_v1 = vmov 0.0   ;;  %v42_v2 = vld [vmem:[#allocation5] sm:$0xff] }
  0x27   :  { %186 = vmatprep.subr.bf16.mxu0 %v285_v0  ;;  %183 = vmatprep.mubr.msk.f32.mxu0 %vm286_vm0, %v287_v1  ;;  %v43_v3 = vld [vmem:[#allocation5 + $0x8] sm:$0xff]  ;;  %v44_v4 = vld [vmem:[#allocation5 + $0x10] sm:$0xff]  ;;  %v45_v6 = vld [vmem:[#allocation5 + $0x18] sm:$0xff]  ;;  %vm59_vm1 = vcmask 654336   ;;  %s288_s11 = smov [#allocation7]  }
  0x28   :  { %v187_v5 = vpack.c.bf16 %v43_v3, %v42_v2  ;;  %v190_v7 = vpack.c.bf16 %v45_v6, %v44_v4  ;;  %v46_v8 = vld [vmem:[#allocation5 + $0x20] sm:$0xff]  ;;  %v47_v9 = vld [vmem:[#allocation5 + $0x28] sm:$0xff]  ;;  %v48_v11 = vld [vmem:[#allocation5 + $0x30] sm:$0xff]  ;;  %s140_s12 = sshll.u32 %s288_s11, 4  ;;  %s141_s12 = int_to_ptr.vmem [resolvable:$true] %s140_s12 }
  0x29   :  { %v193_v10 = vpack.c.bf16 %v47_v9, %v46_v8  ;;  %v49_v12 = vld [vmem:[#allocation5 + $0x38] sm:$0xff]  ;;  %v50_v14 = vld [vmem:[#allocation5 + $0x40] sm:$0xff]  ;;  %v51_v15 = vld [vmem:[#allocation5 + $0x48] sm:$0xff]  ;;  %s253_s13 = scalar_lea.vmem %s141_s12, 128  ;;  %p258_p3 = scmp.lt.s32.totalorder %s141_s12, %s141_s12 }
  0x2a   :  { %188 = vmatpush3.bf16.msra.mxu0 %v187_v5  ;;  %v196_v13 = vpack.c.bf16 %v49_v12, %v48_v11  ;;  %v199_v16 = vpack.c.bf16 %v51_v15, %v50_v14  ;;  %v41_v17 = vld [vmem:[#allocation2] sm:$0xff]  ;;  %p254_p2 = scmp.ne.s32.totalorder %s141_s12, %s253_s13  ;;  %p259_p4 = scmp.lt.s32.totalorder %s253_s13, %s253_s13 }
  0x2b   :  { %189 = vmatprep.subr.bf16.mxu0 %v285_v0  ;;  %v150_v18 = vld [vmem:[%s357_s2] ss:$0 sm:$0xff] }
  0x2c   :  { %p260_p5 = por %p259_p4, %p258_p3 }
  0x2e   :  { %191 = vmatpush3.bf16.msra.mxu0 %v190_v7  ;;  %p261_p6 = pnand %p260_p5, %p254_p2 }
  0x2f   :  { %192 = vmatprep.subr.bf16.mxu0 %v285_v0 }
  0x32   :  { %194 = vmatpush3.bf16.msra.mxu0 %v193_v10 }
  0x33   :  { %195 = vmatprep.subr.bf16.mxu0 %v285_v0 }
  0x36   :  { %197 = vmatpush3.bf16.msra.mxu0 %v196_v13 }
  0x37   :  { %198 = vmatprep.subr.bf16.mxu0 %v285_v0 }
  0x3a   :  { %200 = vmatpush3.bf16.msra.mxu0 %v199_v16 }
  0x3d   :  { %184 = vmatmul.mubr.msk.f32.vlgmr.msra.gmra.mrb[0].mxu0 %vm59_vm1, %v41_v17 }
 0x110   :  { %v129_v19 = vpop.f32.mrb[0].mxu0 }
 0x111   :  { %v130_v20 = vadd.f32 %v150_v18, %v129_v19  ;;  %v185_v21 = vpop.f32.mrb[1].mxu0 }
 0x113   :  { %133 = vst [vmem:[#allocation7] sm:$0xff] %v130_v20 }
 0x114   :  { %264 = shalt.err (!%p261_p6)
}
 0x115   :  { %s265_s16 = scalar_lea.hbm %s358_s3, 128 }
 0x116   :  { %p266_p7 = scmp.ne.s32.totalorder %s358_s3, %s265_s16  ;;  %p269_p8 = scmp.lt.u32.totalorder %s265_s16, %s358_s3 }
 0x118   :  { %p271_p9 = pnand %p269_p8, %p266_p7 }
 0x11a   :  { %274 = shalt.err (!%p271_p9)
}
 0x11b   :  { %143 = dma.vmem_to_hbm [thread:$0]  %s141_s12, 128, %s358_s3, [#allocation4]  }
 0x11c   :  { %279 = dma.done.wait [#allocation4], 128  }
 0x11d   :  { %280 = vsyncadd [#allocation4], 4294967168 }
 0x11e   :  { %147 = vsyncpa [#allocation3], 1 }
 0x11f   :  { %148 = vsyncpa [#allocation6], 1 }
 0x120   :  { %149 = vsyncpa [#allocation4], 1 }

</bundles_post_ra>
